<compile_context>
chip_gen: v7x
topology: tpu7x:2x2x1
jax: 0.10.0
libtpu: 0.0.40
codegen_flags: <defaults>
</compile_context>

<pallas_src>
import jax
import jax.numpy as jnp
from jax.experimental import pallas as pl
from jax.experimental.pallas import tpu as pltpu

IN_FEATURES = 10
OUT_FEATURES = 1


def _round_up(v, m):
    return ((v + m - 1) // m) * m


def _linear_kernel(x_ref, w_ref, b_ref, o_ref):
    """o[tb, 1] = sum_k x[tb, k] * w[0, k] + b  (VPU mul + XLU lane reduce).

    x_ref: (tb, K) f32 VMEM  -- natural layout, batch on sublanes
    w_ref: (1, K)  f32 VMEM  -- weight row, sublane-broadcast
    b_ref: (1,)    f32 SMEM  -- scalar bias
    o_ref: (tb, 1) f32 VMEM  -- per-row result (masked store; output is tiny)
    """
    prod = x_ref[...] * w_ref[...]                    # VPU, broadcast over sublanes
    acc = jnp.sum(prod, axis=1, keepdims=True)        # lane reduce over K=10
    o_ref[...] = (acc + b_ref[0]).astype(o_ref.dtype)


def linear_forward(x, w, b, *, tile_b=16384):
    """y = x @ w + b, equivalent to nn.Linear(10, 1) forward with w = weight.T."""
    B, K = x.shape
    K2, N = w.shape
    assert K == K2 == IN_FEATURES and N == OUT_FEATURES

    # Batch tile: multiple of 8 (sublane rule); keep >=2 grid steps when possible
    # so v7x's two TensorCores both get work via dimension_semantics=("parallel",).
    half = _round_up(max(1, (B + 1) // 2), 8)
    tb = max(8, min(_round_up(tile_b, 8), half))
    grid = pl.cdiv(B, tb)

    # VMEM budget: (tb, K) and (tb, 1) f32 blocks both lane-pad to 128 in VMEM,
    # i.e. tb*512 B per buffer; 2 input + 2 output double-buffers + headroom.
    buf_bytes = tb * 128 * 4
    vmem_limit = int(min(48 << 20, max(32 << 20, 4 * buf_bytes + (4 << 20))))

    cost = pl.CostEstimate(
        flops=2 * B * K * N,
        transcendentals=0,
        bytes_accessed=B * K * 4 + K * N * 4 + N * 4 + B * N * 4,
    )

    w_row = w.reshape(1, K)  # (10, 1) -> (1, 10): 40-byte relayout, negligible

    return pl.pallas_call(
        _linear_kernel,
        out_shape=jax.ShapeDtypeStruct((B, N), x.dtype),
        grid_spec=pltpu.PrefetchScalarGridSpec(
            num_scalar_prefetch=0,
            grid=(grid,),
            in_specs=[
                # x tiles: batch tiled along sublanes, natural layout, no extra pass
                pl.BlockSpec((tb, K), lambda i: (i, 0)),
                # weight row: same tiny block every step (stays resident)
                pl.BlockSpec((1, K), lambda i: (0, 0)),
                # scalar bias: whole array in SMEM, no VMEM DMA stream
                pl.BlockSpec(memory_space=pltpu.MemorySpace.SMEM),
            ],
            out_specs=pl.BlockSpec((tb, N), lambda i: (i, 0)),
        ),
        compiler_params=pltpu.CompilerParams(
            dimension_semantics=("parallel",),   # megacore sharding on v7x
            vmem_limit_bytes=vmem_limit,         # v5e default (16 MiB) is too small
        ),
        cost_estimate=cost,
    )(x, w_row, b.reshape(N))


if __name__ == "__main__":
    key = jax.random.PRNGKey(0)
    kx, kw, kb = jax.random.split(key, 3)

    batch = 8
    # Deterministic parameter init (mimics nn.Linear uniform init bounds).
    bound = 1.0 / (IN_FEATURES ** 0.5)
    w = jax.random.uniform(
        kw, (IN_FEATURES, OUT_FEATURES), jnp.float32, -bound, bound
    )
    b = jax.random.uniform(kb, (OUT_FEATURES,), jnp.float32, -bound, bound)
    x = jax.random.normal(kx, (batch, IN_FEATURES), jnp.float32)

    y = linear_forward(x, w, b)
    y = jax.block_until_ready(y)

    # Sanity check against plain JAX reference.
    y_ref = x @ w + b
    assert y.shape == (batch, OUT_FEATURES)
    assert jnp.allclose(y, y_ref, atol=1e-5, rtol=1e-5)

    print("KERNEL_OK")
</pallas_src>

<mosaic_0001>
module attributes {stable_mosaic.version = 11 : i64} {
  func.func @_linear_kernel(%arg0: i32, %arg1: memref<8x10xf32, #tpu.memory_space<vmem>>, %arg2: memref<1x10xf32, #tpu.memory_space<vmem>>, %arg3: memref<1xf32, #tpu.memory_space<smem>>, %arg4: memref<8x1xf32, #tpu.memory_space<vmem>>) attributes {dimension_semantics = [#tpu.dimension_semantics<parallel>], iteration_bounds = array<i64: 1>, scalar_prefetch = 0 : i64, scratch_operands = 0 : i64, tpu.core_type = #tpu.core_type<tc>, window_params = [{transform_indices = @transform_0, window_bounds = array<i64: 8, 10>}, {pipeline_mode = #tpu.pipeline_mode<synchronous>, transform_indices = @transform_1, window_bounds = array<i64: 1, 10>}, {transform_indices = @transform_2, window_bounds = array<i64: 1>}, {transform_indices = @transform_3, window_bounds = array<i64: 8, 1>}]} {
    %c0 = arith.constant 0 : index
    %c0_0 = arith.constant 0 : index
    %0 = vector.load %arg1[%c0, %c0_0] : memref<8x10xf32, #tpu.memory_space<vmem>>, vector<8x10xf32>
    %c0_1 = arith.constant 0 : index
    %c0_2 = arith.constant 0 : index
    %1 = vector.load %arg2[%c0_1, %c0_2] : memref<1x10xf32, #tpu.memory_space<vmem>>, vector<1x10xf32>
    %2 = vector.broadcast %1 : vector<1x10xf32> to vector<8x10xf32>
    %3 = arith.mulf %0, %2 : vector<8x10xf32>
    %cst = arith.constant dense<0.000000e+00> : vector<8xf32>
    %4 = vector.multi_reduction <add>, %3, %cst [1] : vector<8x10xf32> to vector<8xf32>
    %5 = vector.shape_cast %4 : vector<8xf32> to vector<8x1xf32>
    %c0_3 = arith.constant 0 : index
    %6 = memref.load %arg3[%c0_3] : memref<1xf32, #tpu.memory_space<smem>>
    %7 = vector.broadcast %6 : f32 to vector<8x1xf32>
    %8 = arith.addf %5, %7 : vector<8x1xf32>
    %c0_4 = arith.constant 0 : index
    %c0_5 = arith.constant 0 : index
    %9 = vector.load %arg4[%c0_4, %c0_5] : memref<8x1xf32, #tpu.memory_space<vmem>>, vector<8x1xf32>
    tpu.vector_store %arg4[%c0_4, %c0_5], %8 {strides = array<i32>} : memref<8x1xf32, #tpu.memory_space<vmem>>, vector<8x1xf32>,
    return
  }
  func.func @transform_0(%arg0: i32) -> (i32, i32) {
    %c0_i32 = arith.constant 0 : i32
    %c0_i32_0 = arith.constant 0 : i32
    return %arg0, %c0_i32 : i32, i32
  }
  func.func @transform_1(%arg0: i32) -> (i32, i32) {
    %c0_i32 = arith.constant 0 : i32
    %c0_i32_0 = arith.constant 0 : i32
    %c0_i32_1 = arith.constant 0 : i32
    return %c0_i32, %c0_i32_0 : i32, i32
  }
  func.func @transform_2(%arg0: i32) -> i32 {
    %c0_i32 = arith.constant 0 : i32
    %c0_i32_0 = arith.constant 0 : i32
    return %c0_i32 : i32
  }
  func.func @transform_3(%arg0: i32) -> (i32, i32) {
    %c0_i32 = arith.constant 0 : i32
    %c0_i32_0 = arith.constant 0 : i32
    return %arg0, %c0_i32 : i32, i32
  }
}

</mosaic_0001>

<bundles_post_ra>
// kernel: tpu_custom_call.1
= control target key start
LH: loop header
LB: loop body
LE: loop exit
PB: predicated region body
PF: predicated region fallthrough
CT: control target
= control target key end

     0   :  { %9 = vsyncpa [#allocation4], 0  ;;  %s76_s12 = smov [#allocation3]   ;;  %s118_s0 = inlined_call_operand.hbm [shape: f32[8,10], index: 0, kind: input, shape index: {}]   ;;  %s119_s1 = inlined_call_operand.vmem [shape: f32[1,10], index: 1, kind: input, shape index: {}]   ;;  %s120_s2 = inlined_call_operand.<no memory space> [shape: f32[1], index: 2, kind: input, shape index: {}]   ;;  %s121_s3 = inlined_call_operand.vmem [shape: f32[8,1], index: 3, kind: output, shape index: {}]  }
   0x1   :  { %s16_s13 = sshll.u32 %s76_s12, 4  ;;  %s52_s16 = scalar_lea.hbm %s118_s0, 128  ;;  %s17_s13 = int_to_ptr.vmem [resolvable:$true] %s16_s13 }
   0x2   :  { %p53_p0 = scmp.ne.s32.totalorder %s118_s0, %s52_s16  ;;  %p56_p1 = scmp.lt.u32.totalorder %s52_s16, %s118_s0 }
   0x4   :  { %p58_p2 = pnand %p56_p1, %p53_p0 }
   0x6   :  { %61 = shalt.err (!%p58_p2)
}
   0x7   :  { %s62_s21 = scalar_lea.vmem %s17_s13, 128  ;;  %p67_p4 = scmp.lt.s32.totalorder %s17_s13, %s17_s13 }
   0x8   :  { %p63_p3 = scmp.ne.s32.totalorder %s17_s13, %s62_s21  ;;  %p68_p5 = scmp.lt.s32.totalorder %s62_s21, %s62_s21 }
   0xa   :  { %p69_p6 = por %p68_p5, %p67_p4 }
   0xc   :  { %p70_p7 = pnand %p69_p6, %p63_p3 }
   0xe   :  { %73 = shalt.err (!%p70_p7)
}
   0xf   :  { %19 = dma.hbm_to_vmem [thread:$0]  %s118_s0, 128, %s17_s13, [#allocation4]  }
  0x10   :  { %74 = dma.done.wait [#allocation4], 128  }
  0x11   :  { %75 = vsyncadd [#allocation4], 4294967168  ;;  %v27_v0 = vld [vmem:[#allocation3] sm:$0xff]  ;;  %vm36_vm0 = vcmask 80896   ;;  %v41_v4 = vstv %s120_s2  ;;  %vm43_vm1 = vcmask 7168  }
  0x12   :  { %v50_v1 = vld [vmem:[%s119_s1] ss:$0 sm:$0xff] }
  0x13   :  { %v35_v2 = vmul.f32 %v50_v1, %v27_v0 }
  0x15   :  { %v37_v3 = vsel %vm36_vm0, %v35_v2, 0.0 }
  0x16   :  { %38 = vadd.xlane.f32.xlu0 %v37_v3 }
  0xa3   :  { %v39_v5 = vpop.xlane.xlu0 %38 }
  0xa4   :  { %v42_v6 = vadd.f32 %v41_v4, %v39_v5 }
  0xa6   :  { %44 = vst.msk [vmem:[%s121_s3] sm:$0xff] %vm43_vm1, %v42_v6 }
  0xa7   :  { %49 = vsyncpa [#allocation4], 1 }

</bundles_post_ra>
